<compile_context>
chip_gen: v5e
topology: v5e:2x2
jax: 0.10.0
libtpu: 0.0.40
codegen_flags: <defaults>
</compile_context>

<pallas_src>
import math
from typing import Dict, Sequence

import jax
import jax.numpy as jnp
from jax.experimental import pallas as pl
from jax.experimental.pallas import tpu as pltpu

DEFAULT_TRUNC_STD = 0.02


# ------------------------------- helpers ----------------------------------- #
def _round_up(x: int, m: int) -> int:
    return (x + m - 1) // m * m


def _choose_tile(dim: int, align: int, cap: int) -> tuple[int, int]:
    """Pick (tile, padded_dim): tile is a multiple of `align`, <= cap, and
    divides padded_dim exactly."""
    aligned = _round_up(dim, align)
    cap = min(cap, aligned)
    cap = max(align, (cap // align) * align)   # keep candidates align-multiples
    for t in range(cap, align - 1, -align):
        if aligned % t == 0:
            return t, aligned
    return align, aligned


def _vmem_capacity_bytes() -> int:
    """Per-TensorCore VMEM capacity; conservative fallback = v7x (64 MiB)."""
    try:
        cap = int(getattr(pltpu.get_tpu_info(), "vmem_capacity_bytes", 0))
        if cap > 0:
            return cap
    except Exception:
        pass
    return 64 * 1024 * 1024


# ----------------------------- Pallas kernels ------------------------------- #
def _linear_bias_kernel(x_ref, wT_ref, b_ref, o_ref):
    # x_ref: (tm, K)  wT_ref: (K, tn)  b_ref: (1, tn)  o_ref: (tm, tn)
    acc = jnp.dot(x_ref[...], wT_ref[...], preferred_element_type=jnp.float32)
    o_ref[...] = (acc + b_ref[...].astype(jnp.float32)).astype(o_ref.dtype)


def _linear_nobias_kernel(x_ref, wT_ref, o_ref):
    o_ref[...] = jnp.dot(
        x_ref[...], wT_ref[...], preferred_element_type=jnp.float32
    ).astype(o_ref.dtype)


def _linear_ktiled_bias_kernel(x_ref, wT_ref, b_ref, o_ref, acc_ref):
    # grid = (M tiles, N tiles, K tiles); f32 accumulator resident across K.
    # Bias seeds the accumulator at k==0 (no extra finalize add).
    k_step = pl.program_id(2)

    @pl.when(k_step == 0)
    def _():
        acc_ref[...] = jnp.broadcast_to(
            b_ref[...].astype(jnp.float32), acc_ref.shape
        )

    acc_ref[...] += jnp.dot(
        x_ref[...], wT_ref[...], preferred_element_type=jnp.float32
    )

    @pl.when(k_step == pl.num_programs(2) - 1)
    def _():
        o_ref[...] = acc_ref[...].astype(o_ref.dtype)


def _linear_ktiled_nobias_kernel(x_ref, wT_ref, o_ref, acc_ref):
    k_step = pl.program_id(2)

    @pl.when(k_step == 0)
    def _():
        acc_ref[...] = jnp.zeros_like(acc_ref)

    acc_ref[...] += jnp.dot(
        x_ref[...], wT_ref[...], preferred_element_type=jnp.float32
    )

    @pl.when(k_step == pl.num_programs(2) - 1)
    def _():
        o_ref[...] = acc_ref[...].astype(o_ref.dtype)


# ------------------------------- wrapper ------------------------------------ #
def linear_pallas(
    x: jax.Array,
    wT: jax.Array,
    bias: jax.Array | None = None,
    *,
    n_out: int | None = None,
    max_untiled_block_bytes: int | None = None,
    vmem_limit_bytes: int | None = None,
    tk_cap: int = 2048,
) -> jax.Array:
    """y = x @ wT + bias with the matmul + bias fused in a tiled Pallas kernel.

    x:     [..., K]  (feature-last, same as PyTorch Linear input)
    wT:    [K, N_pad]  already-transposed weight; may be pre-padded along N.
    bias:  [N] / [1, N_pad] / None
    n_out: logical output features (<= N_pad); defaults to wT.shape[1].
    """
    k, n_stored = wT.shape
    assert x.shape[-1] == k, (x.shape, wT.shape)
    n = n_out if n_out is not None else n_stored
    assert n <= n_stored

    lead = x.shape[:-1]
    m = math.prod(lead) if lead else 1
    x2d = x.reshape(m, k)
    out_dtype = x.dtype
    in_bytes = max(jnp.dtype(x.dtype).itemsize, jnp.dtype(wT.dtype).itemsize)
    out_bytes = jnp.dtype(out_dtype).itemsize
    has_bias = bias is not None

    # ---- generation-aware VMEM budgets ----
    if vmem_limit_bytes is None:
        vmem_limit_bytes = (3 * _vmem_capacity_bytes()) // 4     # 96MiB/48MiB
    block_budget = (4 * int(vmem_limit_bytes)) // 5              # headroom

    # ---- tile selection: dtype-aware sublane M tile, lane-dense N tile ----
    m_align = max(8, 32 // in_bytes)            # 8 f32, 16 bf16, 32 int8/fp8
    tm, m_pad = _choose_tile(m, m_align, 512)
    tn, n_pad = _choose_tile(n_stored, 128, 512)

    # Pad where needed (no-op when the module pre-padded the weight at init).
    if m_pad > m:
        x2d = jnp.pad(x2d, ((0, m_pad - m), (0, 0)))
    if n_pad > n_stored:
        wT = jnp.pad(wT, ((0, 0), (0, n_pad - n_stored)))
    if has_bias:
        b2d = jnp.asarray(bias).reshape(1, -1)
        if b2d.shape[1] < n_pad:
            b2d = jnp.pad(b2d, ((0, 0), (0, n_pad - b2d.shape[1])))
    else:
        b2d = None

    # Double-buffered VMEM footprint of the untiled-K working set.
    def _untiled_vmem(tm_, tn_, k_):
        in_blk = tm_ * k_ + k_ * tn_ + (tn_ if has_bias else 0)
        return 2 * in_blk * in_bytes + 2 * tm_ * tn_ * out_bytes

    # Shrink tiles (never below 256 on the matmul dims) before giving up on
    # the untiled-K path; K tiling adds accumulator traffic + branches.
    while _untiled_vmem(tm, tn, k) > block_budget and max(tm, tn) > 256:
        if tn >= tm and tn > 256:
            tn, _ = _choose_tile(n_pad, 128, tn // 2)
        elif tm > 256:
            tm, _ = _choose_tile(m_pad, m_align, tm // 2)
        else:
            break

    # Megacore: keep >=2 parallel steps for non-trivial problems (v7x 2 TCs).
    m_tiles, n_tiles = m_pad // tm, n_pad // tn
    if m_tiles * n_tiles == 1 and 2 * m_pad * n_pad * k >= (1 << 27):
        if n_pad >= 256 and (n_pad // 2) % 128 == 0:
            tn = n_pad // 2
        elif m_pad >= 2 * m_align:
            tm, _ = _choose_tile(m_pad, m_align, m_pad // 2)
        m_tiles, n_tiles = m_pad // tm, n_pad // tn

    untiled_threshold = block_budget
    if max_untiled_block_bytes is not None:
        untiled_threshold = min(untiled_threshold, max_untiled_block_bytes)
    use_ktile = _untiled_vmem(tm, tn, k) > untiled_threshold

    # TODO(synk): optional bf16 weight/activation path (cast at init + in-kernel
    # f32 accumulation) would roughly double MXU rate on v6e/v7x; kept f32 to
    # match the PyTorch module's numerics.

    if not use_ktile:
        # ---- untiled K: single dot per (i, j) tile, bias fused ----
        x_hbm = m_pad * k * in_bytes
        w_hbm = k * n_pad * in_bytes
        # Keep resident the operand whose re-streaming would cost more:
        #   N-inner: x resident, wT re-read m_tiles times.
        #   M-inner: wT resident, x re-read n_tiles times.
        n_inner = w_hbm * m_tiles <= x_hbm * n_tiles
        if n_inner:
            grid = (m_tiles, n_tiles)
            x_map = lambda i, j: (i, 0)
            w_map = lambda i, j: (0, j)
            o_map = lambda i, j: (i, j)
            streamed = x_hbm + w_hbm * m_tiles
        else:
            grid = (n_tiles, m_tiles)
            x_map = lambda j, i: (i, 0)
            w_map = lambda j, i: (0, j)
            o_map = lambda j, i: (i, j)
            streamed = w_hbm + x_hbm * n_tiles
        bytes_accessed = (
            streamed
            + m_pad * n_pad * out_bytes
            + (n_pad * in_bytes if has_bias else 0)
        )

        in_specs = [
            pl.BlockSpec((tm, k), x_map),
            pl.BlockSpec((k, tn), w_map),
        ]
        operands = [x2d, wT]
        if has_bias:
            in_specs.append(pl.BlockSpec((1, tn), w_map))
            operands.append(b2d)
        kernel = _linear_bias_kernel if has_bias else _linear_nobias_kernel

        out2d = pl.pallas_call(
            kernel,
            out_shape=jax.ShapeDtypeStruct((m_pad, n_pad), out_dtype),
            grid=grid,
            in_specs=in_specs,
            out_specs=pl.BlockSpec((tm, tn), o_map),
            compiler_params=pltpu.CompilerParams(
                dimension_semantics=("parallel", "parallel"),
                vmem_limit_bytes=int(vmem_limit_bytes),
            ),
            cost_estimate=pl.CostEstimate(
                flops=2 * m_pad * n_pad * k,
                transcendentals=0,
                bytes_accessed=int(bytes_accessed),
            ),
        )(*operands)
    else:
        # ---- K-tiled accumulator path ----
        fixed = 2 * tm * tn * out_bytes + tm * tn * 4       # out dbl-buf + acc
        if has_bias:
            fixed += 2 * tn * in_bytes
        avail = max(0, block_budget - fixed)
        tk_budget = avail // max(1, 2 * (tm + tn) * in_bytes)
        tk_eff_cap = max(128, min(int(tk_cap), (tk_budget // 128) * 128))
        tk, k_pad = _choose_tile(k, 128, tk_eff_cap)
        if k_pad > k:
            x2d = jnp.pad(x2d, ((0, 0), (0, k_pad - k)))
            wT = jnp.pad(wT, ((0, k_pad - k), (0, 0)))

        grid = (m_tiles, n_tiles, k_pad // tk)
        in_specs = [
            pl.BlockSpec((tm, tk), lambda i, j, kk: (i, kk)),
            pl.BlockSpec((tk, tn), lambda i, j, kk: (kk, j)),
        ]
        operands = [x2d, wT]
        if has_bias:
            in_specs.append(pl.BlockSpec((1, tn), lambda i, j, kk: (0, j)))
            operands.append(b2d)
        kernel = (
            _linear_ktiled_bias_kernel if has_bias else _linear_ktiled_nobias_kernel
        )
        bytes_accessed = (
            (m_pad * k_pad * n_tiles + k_pad * n_pad * m_tiles) * in_bytes
            + m_pad * n_pad * out_bytes
            + (n_pad * in_bytes if has_bias else 0)
        )

        out2d = pl.pallas_call(
            kernel,
            out_shape=jax.ShapeDtypeStruct((m_pad, n_pad), out_dtype),
            grid=grid,
            in_specs=in_specs,
            out_specs=pl.BlockSpec((tm, tn), lambda i, j, kk: (i, j)),
            scratch_shapes=[pltpu.VMEM((tm, tn), jnp.float32)],
            compiler_params=pltpu.CompilerParams(
                dimension_semantics=("parallel", "parallel", "arbitrary"),
                vmem_limit_bytes=int(vmem_limit_bytes),
            ),
            cost_estimate=pl.CostEstimate(
                flops=2 * m_pad * n_pad * k_pad,
                transcendentals=0,
                bytes_accessed=int(bytes_accessed),
            ),
        )(*operands)

    if m_pad > m or n_pad > n:
        out2d = out2d[:m, :n]
    return out2d.reshape(*lead, n)


# --------------------------- Module-equivalent ------------------------------ #
class LinearPallas:
    """JAX mirror of the PyTorch `Linear` module (split-parameter linear)."""

    def __init__(
        self,
        in_features: int,
        out_features: int,
        bias: bool = True,
        parameters_split: Dict[str, int] | Sequence[str] | None = None,
        *,
        key: jax.Array,
        dtype=jnp.float32,
    ):
        self.in_features = in_features
        self.out_features = out_features
        self.use_bias = bias

        self.weight_names = []
        self.bias_names = []
        self.parameter_split_sizes = []
        if parameters_split is None:
            self.weight_names = ["weight"]
            self.bias_names = ["bias"]
            self.parameter_split_sizes = [out_features]
        elif not parameters_split:
            raise ValueError("Cannot split weight buffer into 0 parameters")
        elif isinstance(parameters_split, dict):
            for name, split_size in parameters_split.items():
                self.weight_names.append(f"{name.rstrip('_')}_weight")
                self.bias_names.append(f"{name.rstrip('_')}_bias")
                self.parameter_split_sizes.append(split_size)
        elif all(isinstance(name, str) for name in parameters_split):
            split_size = out_features // len(parameters_split)
            for name in parameters_split:
                self.weight_names.append(f"{name.rstrip('_')}_weight")
                self.bias_names.append(f"{name.rstrip('_')}_bias")
                self.parameter_split_sizes.append(split_size)
        else:
            raise TypeError("Invalid configuration for parameters split")
        if sum(self.parameter_split_sizes) != out_features:
            raise ValueError(
                f"Trying to split weight buffer (out_features={out_features!r}) "
                f"with split sizes {self.parameter_split_sizes}"
            )

        # Deterministic init: trunc_normal(std=DEFAULT_TRUNC_STD, clipped to
        # +-2*std) per weight split, zeros per bias split.
        self.params = {}
        keys = jax.random.split(key, len(self.parameter_split_sizes))
        for i, split_size in enumerate(self.parameter_split_sizes):
            lo = -2.0 / DEFAULT_TRUNC_STD
            hi = 2.0 / DEFAULT_TRUNC_STD
            w = (
                jax.random.truncated_normal(
                    keys[i], lo, hi, (split_size, in_features), dtype=jnp.float32
                )
                * DEFAULT_TRUNC_STD
            ).astype(dtype)
            self.params[self.weight_names[i]] = w
            if self.use_bias:
                self.params[self.bias_names[i]] = jnp.zeros((split_size,), dtype=dtype)

        # Hoist per-forward concat + transpose + N-padding (pure HBM rewrite)
        # to init: the kernel only ever streams the padded (K, N_pad) weight.
        n_pad = _round_up(out_features, 128)
        w_cat = jnp.concatenate(
            [self.params[name] for name in self.weight_names], axis=0
        )
        wT = jnp.asarray(w_cat.T)  # (in_features, out_features)
        if n_pad > out_features:
            wT = jnp.pad(wT, ((0, 0), (0, n_pad - out_features)))
        self.wT = wT
        if self.use_bias:
            b_cat = jnp.concatenate(
                [self.params[name] for name in self.bias_names], axis=0
            ).reshape(1, out_features)
            if n_pad > out_features:
                b_cat = jnp.pad(b_cat, ((0, 0), (0, n_pad - out_features)))
            self.bias2d = b_cat
        else:
            self.bias2d = None

    def __call__(self, x: jax.Array) -> jax.Array:
        return linear_pallas(x, self.wT, self.bias2d, n_out=self.out_features)


# --------------------------------- Demo ------------------------------------- #
if __name__ == "__main__":
    key = jax.random.PRNGKey(0)
    k_param, k_x, k_x2, k_w2, k_x3, k_w3 = jax.random.split(key, 6)

    # ---- Check 1: module path with parameters_split (exercises N padding) ----
    B, S, IN, OUT = 2, 8, 32, 64
    mod = LinearPallas(
        IN, OUT, bias=True, parameters_split={"q": 32, "k": 16, "v": 16}, key=k_param
    )
    x = jax.random.normal(k_x, (B, S, IN), dtype=jnp.float32)
    out = jax.block_until_ready(mod(x))
    assert out.shape == (B, S, OUT), out.shape
    w_cat = jnp.concatenate([mod.params[n] for n in mod.weight_names], axis=0)
    b_cat = jnp.concatenate([mod.params[n] for n in mod.bias_names], axis=0)
    ref = x @ w_cat.T + b_cat
    assert jnp.allclose(out, ref, atol=1e-4, rtol=1e-4), "check1 mismatch"

    # ---- Check 2: force the K-tiled accumulator path (multi-step, bias) ----
    M2, K2, N2 = 128, 1024, 256
    x2 = jax.random.normal(k_x2, (M2, K2), dtype=jnp.float32)
    w2 = jax.random.normal(k_w2, (N2, K2), dtype=jnp.float32) * DEFAULT_TRUNC_STD
    b2 = jnp.full((N2,), 0.5, dtype=jnp.float32)
    out2 = jax.block_until_ready(
        linear_pallas(x2, w2.T, b2, max_untiled_block_bytes=0, tk_cap=256)
    )
    assert out2.shape == (M2, N2), out2.shape
    ref2 = x2 @ w2.T + b2
    assert jnp.allclose(out2, ref2, atol=1e-3, rtol=1e-3), "check2 mismatch"

    # ---- Check 3: bias-less untiled path ----
    x3 = jax.random.normal(k_x3, (4, 8, IN), dtype=jnp.float32)
    w3T = jax.random.normal(k_w3, (IN, 128), dtype=jnp.float32) * DEFAULT_TRUNC_STD
    out3 = jax.block_until_ready(linear_pallas(x3, w3T, None))
    ref3 = x3 @ w3T
    assert out3.shape == (4, 8, 128), out3.shape
    assert jnp.allclose(out3, ref3, atol=1e-4, rtol=1e-4), "check3 mismatch"

    # ---- Check 4: bias-less K-tiled path ----
    out4 = jax.block_until_ready(
        linear_pallas(x2, w2.T, None, max_untiled_block_bytes=0, tk_cap=256)
    )
    ref4 = x2 @ w2.T
    assert jnp.allclose(out4, ref4, atol=1e-3, rtol=1e-3), "check4 mismatch"

    print("KERNEL_OK")
</pallas_src>

<mosaic_0001>
module attributes {stable_mosaic.version = 11 : i64} {
  func.func @_linear_bias_kernel(%arg0: i32, %arg1: i32, %arg2: memref<16x32xf32, #tpu.memory_space<vmem>>, %arg3: memref<32x128xf32, #tpu.memory_space<vmem>>, %arg4: memref<1x128xf32, #tpu.memory_space<vmem>>, %arg5: memref<16x128xf32, #tpu.memory_space<vmem>>) attributes {dimension_semantics = [#tpu.dimension_semantics<parallel>, #tpu.dimension_semantics<parallel>], iteration_bounds = array<i64: 1, 1>, scalar_prefetch = 0 : i64, scratch_operands = 0 : i64, tpu.core_type = #tpu.core_type<tc>, window_params = [{transform_indices = @transform_0, window_bounds = array<i64: 16, 32>}, {transform_indices = @transform_1, window_bounds = array<i64: 32, 128>}, {transform_indices = @transform_2, window_bounds = array<i64: 1, 128>}, {transform_indices = @transform_3, window_bounds = array<i64: 16, 128>}]} {
    %c0 = arith.constant 0 : index
    %c0_0 = arith.constant 0 : index
    %0 = vector.load %arg2[%c0, %c0_0] : memref<16x32xf32, #tpu.memory_space<vmem>>, vector<16x32xf32>
    %c0_1 = arith.constant 0 : index
    %c0_2 = arith.constant 0 : index
    %1 = vector.load %arg3[%c0_1, %c0_2] : memref<32x128xf32, #tpu.memory_space<vmem>>, vector<32x128xf32>
    %cst = arith.constant dense<0.000000e+00> : vector<16x128xf32>
    %2 = tpu.matmul %0, %1, %cst {dimension_numbers = #tpu.dot_dimension_numbers<[1], [0], [0], [1], [0, 0, 1, 1], [], []>} : vector<16x32xf32>, vector<32x128xf32>, vector<16x128xf32> -> vector<16x128xf32>
    %c0_3 = arith.constant 0 : index
    %c0_4 = arith.constant 0 : index
    %3 = vector.load %arg4[%c0_3, %c0_4] : memref<1x128xf32, #tpu.memory_space<vmem>>, vector<1x128xf32>
    %4 = vector.broadcast %3 : vector<1x128xf32> to vector<16x128xf32>
    %5 = arith.addf %2, %4 : vector<16x128xf32>
    %c0_5 = arith.constant 0 : index
    %c0_6 = arith.constant 0 : index
    %6 = vector.load %arg5[%c0_5, %c0_6] : memref<16x128xf32, #tpu.memory_space<vmem>>, vector<16x128xf32>
    tpu.vector_store %arg5[%c0_5, %c0_6], %5 {strides = array<i32>} : memref<16x128xf32, #tpu.memory_space<vmem>>, vector<16x128xf32>,
    return
  }
  func.func @transform_0(%arg0: i32, %arg1: i32) -> (i32, i32) {
    %c0_i32 = arith.constant 0 : i32
    %c0_i32_0 = arith.constant 0 : i32
    return %arg1, %c0_i32 : i32, i32
  }
  func.func @transform_1(%arg0: i32, %arg1: i32) -> (i32, i32) {
    %c0_i32 = arith.constant 0 : i32
    %c0_i32_0 = arith.constant 0 : i32
    return %c0_i32, %arg0 : i32, i32
  }
  func.func @transform_2(%arg0: i32, %arg1: i32) -> (i32, i32) {
    %c0_i32 = arith.constant 0 : i32
    %c0_i32_0 = arith.constant 0 : i32
    return %c0_i32, %arg0 : i32, i32
  }
  func.func @transform_3(%arg0: i32, %arg1: i32) -> (i32, i32) {
    %c0_i32 = arith.constant 0 : i32
    return %arg1, %arg0 : i32, i32
  }
}

</mosaic_0001>

<bundles_post_ra>
// kernel: tpu_custom_call.1
= control target key start
LH: loop header
LB: loop body
LE: loop exit
PB: predicated region body
PF: predicated region fallthrough
CT: control target
= control target key end

     0   :  { %8 = vsyncpa [#allocation3], 0  ;;  %s245_s0 = inlined_call_operand.hbm [shape: f32[16,32], index: 0, kind: input, shape index: {}]   ;;  %s246_s1 = inlined_call_operand.hbm [shape: f32[32,128], index: 1, kind: input, shape index: {}]   ;;  %s247_s2 = inlined_call_operand.vmem [shape: f32[1,128], index: 2, kind: input, shape index: {}]   ;;  %s248_s3 = inlined_call_operand.hbm [shape: f32[16,128], index: 3, kind: output, shape index: {}]  }
   0x1   :  { %9 = vsyncpa [#allocation6], 0 }
   0x2   :  { %10 = vsyncpa [#allocation4], 0  ;;  %s15_s14 = sshll.u32 %s245_s0, 4  ;;  %s199_s15 = smov [#allocation2]   ;;  %s16_s14 = int_to_ptr.hbm [resolvable:$true] %s15_s14 }
   0x3   :  { %s17_s16 = sshll.u32 %s199_s15, 4  ;;  %s28_s19 = sshll.u32 %s246_s1, 4  ;;  %s18_s16 = int_to_ptr.vmem [resolvable:$true] %s17_s16  ;;  %s29_s19 = int_to_ptr.hbm [resolvable:$true] %s28_s19 }
   0x4   :  { %s200_s20 = smov 128   ;;  %s201_s21 = smov 8  }
   0x5   :  { %23 = dma.hbm_to_vmem [thread:$0]  %s16_s14, 256, %s18_s16, [#allocation3], %s200_s20, %s200_s20, %s201_s21  }
   0x6   :  { %s202_s22 = smov [#allocation5]  }
   0x7   :  { %s30_s23 = sshll.u32 %s202_s22, 4  ;;  %s31_s23 = int_to_ptr.vmem [resolvable:$true] %s30_s23 }
   0x8   :  { %36 = dma.hbm_to_vmem [thread:$0]  %s29_s19, 512, %s31_s23, [#allocation6], %s200_s20, %s200_s20, %s201_s21  }
   0x9   :  { %193 = dma.done.wait [#allocation3], 256  }
   0xa   :  { %194 = vsyncadd [#allocation3], 4294967040 }
   0xb   :  { %195 = dma.done.wait [#allocation6], 512  }
   0xc   :  { %196 = vsyncadd [#allocation6], 4294966784  ;;  %v52_v0 = vld [vmem:[#allocation5 + $0x18] sm:$0xff]  ;;  %v51_v1 = vld [vmem:[#allocation5 + $0x10] sm:$0xff]  ;;  %vm57_vm0 = vcmask 261120   ;;  %s203_s24 = smov [#allocation7]  }
   0xd   :  { %76 = vmatpush.msra.mxu0 %v52_v0  ;;  %111 = vmatpush.msra.mxu1 %v52_v0  ;;  %v50_v2 = vld [vmem:[#allocation5 + $0x8] sm:$0xff]  ;;  %v49_v3 = vld [vmem:[#allocation5] sm:$0xff]  ;;  %v47_v4 = vld [vmem:[#allocation2] sm:$0xff]  ;;  %s93_s25 = sshll.u32 %s203_s24, 4  ;;  %s95_s28 = sshll.u32 %s248_s3, 4  ;;  %s94_s25 = int_to_ptr.vmem [resolvable:$true] %s93_s25  ;;  %s96_s28 = int_to_ptr.hbm [resolvable:$true] %s95_s28 }
   0xe   :  { %v48_v5 = vld [vmem:[#allocation2 + $0x8] sm:$0xff]  ;;  %v120_v6 = vld [vmem:[%s247_s2] ss:$0 sm:$0xff] }
   0xf   :  { %77 = vmatpush.msra.mxu0 %v51_v1  ;;  %112 = vmatpush.msra.mxu1 %v51_v1 }
  0x11   :  { %78 = vmatpush.msra.mxu0 %v50_v2  ;;  %113 = vmatpush.msra.mxu1 %v50_v2 }
  0x13   :  { %79 = vmatpush.msra.mxu0 %v49_v3  ;;  %114 = vmatpush.msra.mxu1 %v49_v3 }
  0x14   :  { %109 = vmatmul.msk.f32.vlgmr.msra.gmra.mxu0 %vm57_vm0, %v47_v4  ;;  %110 = vmatmul.msk.f32.vlgmr.msra.gmra.mxu1 %vm57_vm0, %v48_v5 }
  0x91   :  { %v81_v7 = vpop.f32.mrf.mxu0  ;;  %v84_v8 = vpop.f32.mrf.mxu1 }
  0x92   :  { %v82_v9 = vadd.f32 %v120_v6, %v81_v7  ;;  %v85_v10 = vadd.f32 %v120_v6, %v84_v8 }
  0x94   :  { %87 = vst [vmem:[#allocation7] sm:$0xff] %v82_v9 }
  0x95   :  { %88 = vst [vmem:[#allocation7 + $0x8] sm:$0xff] %v85_v10 }
  0x96   :  { %101 = dma.vmem_to_hbm [thread:$0]  %s94_s25, 256, %s96_s28, [#allocation4], %s200_s20, %s200_s20, %s201_s21  }
  0x97   :  { %197 = dma.done.wait [#allocation4], 256  }
  0x98   :  { %198 = vsyncadd [#allocation4], 4294967040 }
  0x99   :  { %106 = vsyncpa [#allocation3], 1 }
  0x9a   :  { %107 = vsyncpa [#allocation6], 1 }
  0x9b   :  { %108 = vsyncpa [#allocation4], 1 }

</bundles_post_ra>
